<compile_context>
chip_gen: v6e
topology: v6e:2x2x1
jax: 0.10.0
libtpu: 0.0.40
codegen_flags: <defaults>
</compile_context>

<pallas_src>
import jax
import jax.numpy as jnp
from jax.experimental import pallas as pl
from jax.experimental.pallas import tpu as pltpu


_SMALL_INPUT_BYTES = 1 << 20      # below this the pallas copy is pure launch overhead
_TARGET_BLOCK_BYTES = 4 << 20     # ~4 MiB blocks: in+out, double-buffered -> ~16 MiB VMEM
_VMEM_LIMIT_BYTES = 32 << 20      # raise v5e's 16 MiB scoped default; fine on v6e/v7x
_MAX_LANE_WIDTH = 32768           # cap on the lane-dense slab width


def _copy_kernel(x_ref, o_ref):
    # Lane-dense identity copy: pure vld/vst stream, no XLU/relayout work.
    o_ref[...] = x_ref[...]


def _sublane_multiple(itemsize: int) -> int:
    # 32-bit: 8 rows/vreg; bf16/fp16: 16; int8/fp8: 32 (sub-32-bit packs along sublanes).
    return max(8, 32 // max(1, itemsize))


def _choose_lane_width(total: int):
    """Largest multiple-of-128 divisor of `total` (<= _MAX_LANE_WIDTH), or None."""
    limit = min(total, _MAX_LANE_WIDTH)
    limit -= limit % 128
    for c in range(limit, 127, -128):
        if total % c == 0:
            return c
    return None


def _pick_block_rows(rows: int, lane_width: int, itemsize: int) -> int:
    """Rows per block: full extent when small, else ~4 MiB blocks on a sublane multiple."""
    sub = _sublane_multiple(itemsize)
    if rows <= sub:
        return rows  # full-extent block (exempt from the (8,128) rule)
    tb = _TARGET_BLOCK_BYTES // max(1, lane_width * itemsize)
    tb = max(sub, (tb // sub) * sub)
    if tb >= rows:
        return rows
    # Prefer a block size that divides rows evenly (no masked tail), staying >= tb/2.
    lo = max(sub, (tb // 2 // sub) * sub)
    for cand in range(tb, lo - 1, -sub):
        if rows % cand == 0:
            return cand
    return tb


def _pallas_copy_2d(x2: jax.Array, tb: int, donate_input: bool) -> jax.Array:
    rows, width = x2.shape
    itemsize = jnp.dtype(x2.dtype).itemsize
    grid = (pl.cdiv(rows, tb),)
    return pl.pallas_call(
        _copy_kernel,
        out_shape=jax.ShapeDtypeStruct((rows, width), x2.dtype),
        grid_spec=pltpu.PrefetchScalarGridSpec(
            num_scalar_prefetch=0,
            grid=grid,
            in_specs=[pl.BlockSpec((tb, width), lambda i: (i, 0))],
            out_specs=pl.BlockSpec((tb, width), lambda i: (i, 0)),
        ),
        compiler_params=pltpu.CompilerParams(
            dimension_semantics=("parallel",),
            vmem_limit_bytes=_VMEM_LIMIT_BYTES,
        ),
        cost_estimate=pl.CostEstimate(
            flops=0,
            transcendentals=0,
            bytes_accessed=2 * rows * width * itemsize,
        ),
        input_output_aliases=({0: 0} if donate_input else {}),
    )(x2)


def flatten_layer(x: jax.Array, *, force_kernel: bool = False,
                  donate_input: bool = False) -> jax.Array:
    """Pallas equivalent of FlattenLayer.forward: (B, *rest) -> (B, prod(rest))."""
    B = x.shape[0]
    F = 1
    for d in x.shape[1:]:
        F *= d
    total = B * F
    itemsize = jnp.dtype(x.dtype).itemsize

    # Fast path: the row-major flatten is a free metadata reshape; skip the copy.
    if total == 0 or (not force_kernel and total * itemsize < _SMALL_INPUT_BYTES):
        return x.reshape(B, F)

    lane_width = _choose_lane_width(total)
    if lane_width is not None:
        # Shape-agnostic lane/sublane-dense slab: unmasked full-width stores.
        rows = total // lane_width
    else:
        # Fallback: (B, F) with full-extent last dim (still unmasked per-row stores).
        rows, lane_width = B, F

    tb = _pick_block_rows(rows, lane_width, itemsize)
    slab = x.reshape(rows, lane_width)          # free metadata reshape (contiguous)
    out = _pallas_copy_2d(slab, tb, donate_input)
    return out.reshape(B, F)                    # free metadata reshape back


if __name__ == "__main__":
    key = jax.random.PRNGKey(0)
    # Small NCHW input consistent with a conv-net flatten: batch=2, channels=4, 16x16.
    x = jax.random.normal(key, (2, 4, 16, 16), dtype=jnp.float32)
    ref = x.reshape(x.shape[0], -1)

    # Auto path: tiny input -> free metadata reshape, no kernel launch.
    out_fast = jax.block_until_ready(flatten_layer(x))

    # Forced kernel path: lane-dense Pallas identity copy (slab = (1, 2048) here).
    out_kernel = jax.block_until_ready(flatten_layer(x, force_kernel=True))

    # Forced kernel path with output aliased onto the input buffer.
    out_alias = jax.block_until_ready(
        flatten_layer(x, force_kernel=True, donate_input=True))

    for out in (out_fast, out_kernel, out_alias):
        assert out.shape == (2, 4 * 16 * 16), out.shape
        assert out.dtype == x.dtype
        assert jnp.array_equal(out, ref), "flatten mismatch"

    print("KERNEL_OK")
</pallas_src>

<mosaic_0001>
module attributes {stable_mosaic.version = 11 : i64} {
  func.func @_copy_kernel(%arg0: i32, %arg1: memref<1x2048xf32, #tpu.memory_space<vmem>>, %arg2: memref<1x2048xf32, #tpu.memory_space<vmem>>) attributes {dimension_semantics = [#tpu.dimension_semantics<parallel>], iteration_bounds = array<i64: 1>, scalar_prefetch = 0 : i64, scratch_operands = 0 : i64, tpu.core_type = #tpu.core_type<tc>, window_params = [{transform_indices = @transform_0, window_bounds = array<i64: 1, 2048>}, {transform_indices = @transform_1, window_bounds = array<i64: 1, 2048>}]} {
    %c0 = arith.constant 0 : index
    %c0_0 = arith.constant 0 : index
    %0 = vector.load %arg1[%c0, %c0_0] : memref<1x2048xf32, #tpu.memory_space<vmem>>, vector<1x2048xf32>
    %c0_1 = arith.constant 0 : index
    %c0_2 = arith.constant 0 : index
    %1 = vector.load %arg2[%c0_1, %c0_2] : memref<1x2048xf32, #tpu.memory_space<vmem>>, vector<1x2048xf32>
    tpu.vector_store %arg2[%c0_1, %c0_2], %0 {strides = array<i32>} : memref<1x2048xf32, #tpu.memory_space<vmem>>, vector<1x2048xf32>,
    return
  }
  func.func @transform_0(%arg0: i32) -> (i32, i32) {
    %c0_i32 = arith.constant 0 : i32
    %c0_i32_0 = arith.constant 0 : i32
    return %arg0, %c0_i32 : i32, i32
  }
  func.func @transform_1(%arg0: i32) -> (i32, i32) {
    %c0_i32 = arith.constant 0 : i32
    %c0_i32_0 = arith.constant 0 : i32
    return %arg0, %c0_i32 : i32, i32
  }
}

</mosaic_0001>

<bundles_post_ra>
// kernel: tpu_custom_call.1
= control target key start
LH: loop header
LB: loop body
LE: loop exit
PB: predicated region body
PF: predicated region fallthrough
CT: control target
= control target key end

     0   :  { %6 = vsyncpa [#allocation3], 0  ;;  %s104_s0 = inlined_call_operand.hbm [shape: f32[1,2048], index: 0, kind: input, shape index: {}]   ;;  %s105_s1 = inlined_call_operand.hbm [shape: f32[1,2048], index: 1, kind: output, shape index: {}]  }
   0x1   :  { %7 = vsyncpa [#allocation4], 0  ;;  %s86_s6 = smov [#allocation2]  }
   0x2   :  { %s14_s7 = sshll.u32 %s86_s6, 4  ;;  %s15_s7 = int_to_ptr.vmem [resolvable:$true] %s14_s7 }
   0x3   :  { %s50_s8 = scalar_lea.vmem %s15_s7, 256  ;;  %p55_p1 = scmp.lt.s32.totalorder %s15_s7, %s15_s7 }
   0x4   :  { %p51_p0 = scmp.ne.s32.totalorder %s15_s7, %s50_s8  ;;  %p56_p2 = scmp.lt.s32.totalorder %s50_s8, %s50_s8 }
   0x6   :  { %p57_p3 = por %p56_p2, %p55_p1 }
   0x8   :  { %p58_p4 = pnand %p57_p3, %p51_p0 }
   0xa   :  { %61 = shalt.err (!%p58_p4)
}
   0xb   :  { %17 = dma.hbm_to_vmem [thread:$0]  %s104_s0, 256, %s15_s7, [#allocation3]  }
   0xc   :  { %82 = dma.done.wait [#allocation3], 256  }
   0xd   :  { %83 = vsyncadd [#allocation3], 4294967040  ;;  %s87_s11 = smov [#allocation5]   ;;  %v21_v0 = vld [vmem:[#allocation2] sm:$0xff]  ;;  %v22_v1 = vld [vmem:[#allocation2 + $0x8] sm:$0xff] }
   0xe   :  { %s31_s12 = sshll.u32 %s87_s11, 4  ;;  %23 = vst [vmem:[#allocation5] sm:$0xff] %v21_v0  ;;  %24 = vst [vmem:[#allocation5 + $0x8] sm:$0xff] %v22_v1  ;;  %s32_s12 = int_to_ptr.vmem [resolvable:$true] %s31_s12 }
   0xf   :  { %s62_s13 = scalar_lea.vmem %s32_s12, 256  ;;  %p67_p6 = scmp.lt.s32.totalorder %s32_s12, %s32_s12 }
  0x10   :  { %p63_p5 = scmp.ne.s32.totalorder %s32_s12, %s62_s13  ;;  %p68_p7 = scmp.lt.s32.totalorder %s62_s13, %s62_s13 }
  0x12   :  { %p69_p8 = por %p68_p7, %p67_p6 }
  0x14   :  { %p70_p9 = pnand %p69_p8, %p63_p5 }
  0x16   :  { %73 = shalt.err (!%p70_p9)
}
  0x17   :  { %34 = dma.vmem_to_hbm [thread:$0]  %s32_s12, 256, %s105_s1, [#allocation4]  }
  0x18   :  { %84 = dma.done.wait [#allocation4], 256  }
  0x19   :  { %85 = vsyncadd [#allocation4], 4294967040 }
  0x1a   :  { %38 = vsyncpa [#allocation3], 1 }
  0x1b   :  { %39 = vsyncpa [#allocation4], 1 }

</bundles_post_ra>
